<compile_context>
chip_gen: v5e
topology: v5e:2x2
jax: 0.10.0
libtpu: 0.0.40
codegen_flags: <defaults>
</compile_context>

<pallas_src>
import math
import numpy as np
import jax
import jax.numpy as jnp
from jax.experimental import pallas as pl
from jax.experimental.pallas import tpu as pltpu


# ----------------------------- blur-kernel weights (1D, separable) ------------------------------

def _kernel_1d(n: int, kernel_type: str) -> np.ndarray:
    assert n > 0
    if kernel_type == "binomial":
        x = [1.0]
        for k in range(n - 1):
            x.append(x[k] * (n - 1 - k) / (k + 1))
        a = np.asarray(x, dtype=np.float64)
    elif kernel_type == "box":
        a = np.ones((n,), dtype=np.float64)
    else:
        raise ValueError(f"Unknown kernel type: {kernel_type}.")
    return a / a.sum()


# ----------------------------- VMEM budgeting ----------------------------------------------------

def _tile_bytes(rows: int, cols: int, itemsize: int) -> int:
    # account for (8, 128) physical tiling of the last two dims
    r = ((rows + 7) // 8) * 8
    c = ((cols + 127) // 128) * 128
    return r * c * itemsize


def _per_channel_vmem_bytes(h, w, hp, wp, ho, wo, wd, in_itemsize, out_itemsize, stride):
    b = 2 * _tile_bytes(h, w, in_itemsize)           # double-buffered input block
    b += 2 * _tile_bytes(ho, wo, out_itemsize)       # double-buffered output block
    b += _tile_bytes(hp, wp, in_itemsize)            # zero-padded scratch
    b += _tile_bytes(hp, wp, 4)                      # f32 upcast of padded block
    b += 2 * _tile_bytes(hp, max(wo, wd), 4)         # horizontal-pass temporaries
    b += _tile_bytes(ho, wo, 4)                      # output value
    if stride > 1:
        b += _tile_bytes(hp, wo, 4)                  # hb scratch for strided reads
    return b


def _pick_channel_tile(c: int, per_channel_bytes: int, budget: int) -> int:
    for cand in range(c, 0, -1):
        if c % cand == 0 and cand * per_channel_bytes <= budget:
            return cand
    return 1


# ----------------------------- Pallas kernel ------------------------------------------------------

def _make_blur_kernel(a1d, k: int, stride: int, p1: int,
                      h: int, w: int, hp: int, wp: int, ho: int, wo: int,
                      use_pad: bool):
    a = [float(v) for v in a1d]          # baked as weak-typed constants

    if stride > 1:
        wd = (wo - 1) * stride + 1       # dense horizontal span covering all strided columns
        sw = np.zeros((wd, wo), np.float32)
        sw[np.arange(wo) * stride, np.arange(wo)] = 1.0   # column-selection matrix

    def kernel(x_ref, o_ref, *scratch):
        idx = 0
        if use_pad:
            pad_ref = scratch[idx]; idx += 1
        if stride > 1:
            hb_ref = scratch[idx]; idx += 1

        # ----- build zero-padded input block, upcast once -----
        if use_pad:
            pad_ref[...] = jnp.zeros_like(pad_ref)
            pad_ref[:, p1:p1 + h, p1:p1 + w] = x_ref[0]
            x = pad_ref[...].astype(jnp.float32)          # (tc, hp, wp)
        else:
            x = x_ref[0].astype(jnp.float32)              # (tc, hp, wp) == (tc, h, w)
        tc = x.shape[0]

        if stride == 1:
            # ----- horizontal 1D pass (k terms, lane-direction shifts) -----
            hb = a[0] * x[:, :, 0:wo]
            for j in range(1, k):
                hb = hb + a[j] * x[:, :, j:j + wo]
            # ----- vertical 1D pass (k terms, sublane-direction shifts) -----
            out = a[0] * hb[:, 0:ho, :]
            for i in range(1, k):
                out = out + a[i] * hb[:, i:i + ho, :]
        else:
            # ----- horizontal pass over the dense strided span -----
            hb_dense = a[0] * x[:, :, 0:wd]
            for j in range(1, k):
                hb_dense = hb_dense + a[j] * x[:, :, j:j + wd]
            # W-stride: select every stride-th column with a tiny constant matmul (MXU)
            sel = jnp.asarray(sw)
            hb = jnp.dot(hb_dense.reshape(tc * hp, wd), sel,
                         preferred_element_type=jnp.float32).reshape(tc, hp, wo)
            hb_ref[...] = hb
            # H-stride applied at load time via sublane-strided reads
            out = a[0] * hb_ref[:, pl.ds(0, ho, stride), :]
            for i in range(1, k):
                out = out + a[i] * hb_ref[:, pl.ds(i, ho, stride), :]

        o_ref[0] = out.astype(o_ref.dtype)

    return kernel


# ----------------------------- wrapper -------------------------------------------------------------

def blur2d(x, kernel_size: int, kernel_type: str = "binomial", stride: int = 1, padding=0):
    """Equivalent of Blur2d.forward: F.conv2d(F.pad(x, pad), kernel, stride, groups=C)."""
    n, c, h, w = x.shape
    k = int(kernel_size)

    if isinstance(padding, float):
        p1, p2 = math.floor(padding), math.ceil(padding)
    else:
        p1 = p2 = int(padding)

    hp, wp = h + p1 + p2, w + p1 + p2
    ho = (hp - k) // stride + 1
    wo = (wp - k) // stride + 1
    assert ho > 0 and wo > 0, "output spatial size must be positive"

    use_pad = (p1 > 0) or (p2 > 0)
    a = _kernel_1d(k, kernel_type)
    wd = (wo - 1) * stride + 1

    in_it = x.dtype.itemsize
    out_it = x.dtype.itemsize
    per_c = _per_channel_vmem_bytes(h, w, hp, wp, ho, wo, wd, in_it, out_it, stride)
    tc = _pick_channel_tile(c, per_c, budget=16 * 1024 * 1024)

    scratch_shapes = []
    if use_pad:
        scratch_shapes.append(pltpu.VMEM((tc, hp, wp), x.dtype))
    if stride > 1:
        scratch_shapes.append(pltpu.VMEM((tc, hp, wo), jnp.float32))

    kern = _make_blur_kernel(a, k, stride, p1, h, w, hp, wp, ho, wo, use_pad)

    cost = pl.CostEstimate(
        flops=int(4 * k * n * c * ho * wo),                       # separable: ~2k MACs/output
        transcendentals=0,
        bytes_accessed=int(x.size * in_it + n * c * ho * wo * out_it),
    )

    return pl.pallas_call(
        kern,
        out_shape=jax.ShapeDtypeStruct((n, c, ho, wo), x.dtype),
        grid=(n, c // tc),
        in_specs=[pl.BlockSpec((1, tc, h, w), lambda ni, ci: (ni, ci, 0, 0))],
        out_specs=pl.BlockSpec((1, tc, ho, wo), lambda ni, ci: (ni, ci, 0, 0)),
        scratch_shapes=scratch_shapes,
        compiler_params=pltpu.CompilerParams(
            dimension_semantics=("parallel", "parallel"),
            vmem_limit_bytes=32 * 1024 * 1024),
        cost_estimate=cost,
    )(x)


# ----------------------------- reference (plain JAX, for correctness check) -----------------------

def blur2d_ref(x, kernel_size, kernel_type="binomial", stride=1, padding=0):
    n, c, h, w = x.shape
    if isinstance(padding, float):
        p1, p2 = math.floor(padding), math.ceil(padding)
    else:
        p1 = p2 = int(padding)
    xp = jnp.pad(x, ((0, 0), (0, 0), (p1, p2), (p1, p2)))
    a = _kernel_1d(kernel_size, kernel_type)
    k2 = jnp.asarray(np.outer(a, a).astype(np.float32))
    wgt = jnp.broadcast_to(k2[None, None], (c, 1, kernel_size, kernel_size)).astype(x.dtype)
    return jax.lax.conv_general_dilated(
        xp, wgt, window_strides=(stride, stride), padding="VALID",
        dimension_numbers=("NCHW", "OIHW", "NCHW"), feature_group_count=c)


# ----------------------------- main ----------------------------------------------------------------

if __name__ == "__main__":
    key = jax.random.PRNGKey(0)
    x = jax.random.normal(key, (2, 4, 16, 16), dtype=jnp.float32)

    cases = [
        dict(kernel_size=3, kernel_type="binomial", stride=1, padding=1),
        dict(kernel_size=2, kernel_type="box", stride=1, padding=0),
        dict(kernel_size=5, kernel_type="binomial", stride=1, padding=1.5),
    ]
    for cfg in cases:
        out = jax.block_until_ready(blur2d(x, **cfg))
        ref = jax.block_until_ready(blur2d_ref(x, **cfg))
        assert out.shape == ref.shape, (out.shape, ref.shape, cfg)
        assert jnp.allclose(out, ref, atol=1e-5, rtol=1e-5), cfg

    print("KERNEL_OK")
</pallas_src>

<mosaic_0001>
module attributes {stable_mosaic.version = 11 : i64} {
  func.func @kernel(%arg0: i32, %arg1: i32, %arg2: memref<1x4x16x16xf32, #tpu.memory_space<vmem>>, %arg3: memref<1x4x16x16xf32, #tpu.memory_space<vmem>>, %arg4: memref<4x18x18xf32, #tpu.memory_space<vmem>>) attributes {dimension_semantics = [#tpu.dimension_semantics<parallel>, #tpu.dimension_semantics<parallel>], iteration_bounds = array<i64: 2, 1>, scalar_prefetch = 0 : i64, scratch_operands = 1 : i64, tpu.core_type = #tpu.core_type<tc>, window_params = [{transform_indices = @transform_0, window_bounds = array<i64: 1, 4, 16, 16>}, {transform_indices = @transform_1, window_bounds = array<i64: 1, 4, 16, 16>}]} {
    %cst = arith.constant 0.000000e+00 : f32
    %0 = vector.broadcast %cst : f32 to vector<4x18x18xf32>
    %c0 = arith.constant 0 : index
    %c0_0 = arith.constant 0 : index
    %c0_1 = arith.constant 0 : index
    %1 = vector.load %arg4[%c0, %c0_0, %c0_1] : memref<4x18x18xf32, #tpu.memory_space<vmem>>, vector<4x18x18xf32>
    tpu.vector_store %arg4[%c0, %c0_0, %c0_1], %0 {strides = array<i32>} : memref<4x18x18xf32, #tpu.memory_space<vmem>>, vector<4x18x18xf32>,
    %c0_2 = arith.constant 0 : index
    %c0_3 = arith.constant 0 : index
    %c0_4 = arith.constant 0 : index
    %c0_5 = arith.constant 0 : index
    %2 = vector.load %arg2[%c0_2, %c0_3, %c0_4, %c0_5] : memref<1x4x16x16xf32, #tpu.memory_space<vmem>>, vector<1x4x16x16xf32>
    %3 = vector.shape_cast %2 : vector<1x4x16x16xf32> to vector<4x16x16xf32>
    %c0_6 = arith.constant 0 : index
    %c1 = arith.constant 1 : index
    %c1_7 = arith.constant 1 : index
    %4 = vector.load %arg4[%c0_6, %c1, %c1_7] : memref<4x18x18xf32, #tpu.memory_space<vmem>>, vector<4x16x16xf32>
    tpu.vector_store %arg4[%c0_6, %c1, %c1_7], %3 {strides = array<i32>} : memref<4x18x18xf32, #tpu.memory_space<vmem>>, vector<4x16x16xf32>,
    %c0_8 = arith.constant 0 : index
    %c0_9 = arith.constant 0 : index
    %c0_10 = arith.constant 0 : index
    %5 = vector.load %arg4[%c0_8, %c0_9, %c0_10] : memref<4x18x18xf32, #tpu.memory_space<vmem>>, vector<4x18x18xf32>
    %6 = vector.extract_strided_slice %5 {offsets = [0, 0, 0], sizes = [4, 18, 16], strides = [1, 1, 1]} : vector<4x18x18xf32> to vector<4x18x16xf32>
    %cst_11 = arith.constant 2.500000e-01 : f32
    %7 = vector.broadcast %cst_11 : f32 to vector<4x18x16xf32>
    %8 = arith.mulf %7, %6 : vector<4x18x16xf32>
    %9 = vector.extract_strided_slice %5 {offsets = [0, 0, 1], sizes = [4, 18, 16], strides = [1, 1, 1]} : vector<4x18x18xf32> to vector<4x18x16xf32>
    %cst_12 = arith.constant 5.000000e-01 : f32
    %10 = vector.broadcast %cst_12 : f32 to vector<4x18x16xf32>
    %11 = arith.mulf %10, %9 : vector<4x18x16xf32>
    %12 = arith.addf %8, %11 : vector<4x18x16xf32>
    %13 = vector.extract_strided_slice %5 {offsets = [0, 0, 2], sizes = [4, 18, 16], strides = [1, 1, 1]} : vector<4x18x18xf32> to vector<4x18x16xf32>
    %cst_13 = arith.constant 2.500000e-01 : f32
    %14 = vector.broadcast %cst_13 : f32 to vector<4x18x16xf32>
    %15 = arith.mulf %14, %13 : vector<4x18x16xf32>
    %16 = arith.addf %12, %15 : vector<4x18x16xf32>
    %17 = vector.extract_strided_slice %16 {offsets = [0, 0, 0], sizes = [4, 16, 16], strides = [1, 1, 1]} : vector<4x18x16xf32> to vector<4x16x16xf32>
    %cst_14 = arith.constant 2.500000e-01 : f32
    %18 = vector.broadcast %cst_14 : f32 to vector<4x16x16xf32>
    %19 = arith.mulf %18, %17 : vector<4x16x16xf32>
    %20 = vector.extract_strided_slice %16 {offsets = [0, 1, 0], sizes = [4, 16, 16], strides = [1, 1, 1]} : vector<4x18x16xf32> to vector<4x16x16xf32>
    %cst_15 = arith.constant 5.000000e-01 : f32
    %21 = vector.broadcast %cst_15 : f32 to vector<4x16x16xf32>
    %22 = arith.mulf %21, %20 : vector<4x16x16xf32>
    %23 = arith.addf %19, %22 : vector<4x16x16xf32>
    %24 = vector.extract_strided_slice %16 {offsets = [0, 2, 0], sizes = [4, 16, 16], strides = [1, 1, 1]} : vector<4x18x16xf32> to vector<4x16x16xf32>
    %cst_16 = arith.constant 2.500000e-01 : f32
    %25 = vector.broadcast %cst_16 : f32 to vector<4x16x16xf32>
    %26 = arith.mulf %25, %24 : vector<4x16x16xf32>
    %27 = arith.addf %23, %26 : vector<4x16x16xf32>
    %c0_17 = arith.constant 0 : index
    %c0_18 = arith.constant 0 : index
    %c0_19 = arith.constant 0 : index
    %c0_20 = arith.constant 0 : index
    %28 = vector.load %arg3[%c0_17, %c0_18, %c0_19, %c0_20] : memref<1x4x16x16xf32, #tpu.memory_space<vmem>>, vector<1x4x16x16xf32>
    %29 = vector.shape_cast %28 : vector<1x4x16x16xf32> to vector<4x16x16xf32>
    %30 = vector.shape_cast %27 : vector<4x16x16xf32> to vector<1x4x16x16xf32>
    tpu.vector_store %arg3[%c0_17, %c0_18, %c0_19, %c0_20], %30 {strides = array<i32>} : memref<1x4x16x16xf32, #tpu.memory_space<vmem>>, vector<1x4x16x16xf32>,
    return
  }
  func.func @transform_0(%arg0: i32, %arg1: i32) -> (i32, i32, i32, i32) {
    %c0_i32 = arith.constant 0 : i32
    %c0_i32_0 = arith.constant 0 : i32
    %c0_i32_1 = arith.constant 0 : i32
    return %arg0, %arg1, %c0_i32, %c0_i32_0 : i32, i32, i32, i32
  }
  func.func @transform_1(%arg0: i32, %arg1: i32) -> (i32, i32, i32, i32) {
    %c0_i32 = arith.constant 0 : i32
    %c0_i32_0 = arith.constant 0 : i32
    %c0_i32_1 = arith.constant 0 : i32
    return %arg0, %arg1, %c0_i32, %c0_i32_0 : i32, i32, i32, i32
  }
}

</mosaic_0001>

<bundles_post_ra>
// kernel: tpu_custom_call.1
= control target key start
LH: loop header
LB: loop body
LE: loop exit
PB: predicated region body
PF: predicated region fallthrough
CT: control target
= control target key end

     0   :  { %6 = vsyncpa [#allocation4], 0  ;;  %s1051_s0 = inlined_call_operand.hbm [shape: f32[2,4,16,16], index: 0, kind: input, shape index: {}]   ;;  %s1052_s1 = inlined_call_operand.hbm [shape: f32[2,4,16,16], index: 1, kind: output, shape index: {}]  }
   0x1   :  { %8 = vsyncpa [#allocation4 + $0x1], 0 }
   0x2   :  { %9 = vsyncpa [#allocation5], 0 }
   0x3   :  { %11 = vsyncpa [#allocation5 + $0x1], 0  ;;  %s833_s6 = smov 0   ;;  %s835_s7 = smov 0  }
   0x4   :  { %s837_s8 = smov 0   ;;  %s839_s9 = smov 0  }
   0x5   :  { %s841_s10 = smov 0   ;;  %s843_s11 = smov 0  }
   0x6 LB: > { %s614_s12 = sadd.s32 4294967295, %s813_s11   ;;  %s615_s13 = sadd.s32 4294967294, %s813_s11   ;;  %s813_s11 = sphi %s843_s11, %s17_s11   ;;  %s809_s10 = sphi %s841_s10, %s1061_s10   ;;  %s805_s9 = sphi %s839_s9, %s1060_s9   ;;  %s801_s8 = sphi %s837_s8, %s1059_s8   ;;  %s797_s7 = sphi %s835_s7, %s1058_s7   ;;  %s793_s6 = sphi %s833_s6, %s1057_s6  }
   0x7   : > { %s29_s14 = sadd.s32 1, %s809_s10  ;;  %s38_s15 = sadd.s32 1, %s801_s8 }
   0x8   : > { %p31_p0 = scmp.ge.s32.totalorder %s29_s14, 2  ;;  %p45_p1 = scmp.ne.s32.totalorder %s801_s8, %s797_s7 }
   0x9   : > { %p46_p2 = scmp.eq.s32.totalorder %s813_s11, 0  ;;  %p51_p3 = scmp.ne.s32.totalorder %s797_s7, %s793_s6 }
   0xa   : > { %s1063_s14 = smov (%p31_p0, %s29_s14), 0  ;;  %p52_p5 = scmp.eq.s32.totalorder %s614_s12, 0 }
   0xb   : > { %p874_p4 = por %p46_p2, %p45_p1  ;;  %s33_s17 = ssub.s32 %s809_s10, %s1063_s14 }
   0xc   : > { %p77_p6 = scmp.eq.s32.totalorder %s614_s12, 1  ;;  %p36_p7 = scmp.eq.s32.totalorder %s33_s17, 0 }
   0xd   : > { %p880_p8 = por %p52_p5, %p51_p3  ;;  %p83_p10 = scmp.eq.s32.totalorder %s615_s13, 1 }
   0xe   : > { %p884_p9 = por %p77_p6, %p45_p1  ;;  %p617_p12 = scmp.ge.s32.totalorder %s813_s11, 2 }
   0xf   : > { %s889_s20 = scalar_select %p36_p7, %s801_s8, %s38_s15  }
  0x10   : > { %p891_p11 = por %p83_p10, %p51_p3  ;;  %p643_p13 = scmp.lt.s32.totalorder %s813_s11, 2 }
  0x11   : > { %s103_s22 = sand.u32 1, %s801_s8   ;;  %s629_s24 = sshll.u32 %s809_s10, 6 }
  0x12   : > { %s618_s23 = sshll.u32 %s103_s22, 6  ;;  %s115_s27 = scalar_lea.hbm %s1051_s0, %s629_s24 }
  0x13   : > { %s107_s28 = scalar_lea.vmem [#allocation3], %s618_s23  ;;  %s116_s30 = sshll.u32 %s115_s27, 4  ;;  %s117_s30 = int_to_ptr.hbm [resolvable:$true] %s116_s30 }
  0x14   : > { %s118_s29 = sshll.u32 %s107_s28, 4  ;;  %p636_p0 = pnand %p643_p13, %p874_p4  ;;  %s119_s29 = int_to_ptr.vmem [resolvable:$true] %s118_s29 }
  0x15   : > { %p621_p1 = scmp.ge.s32.totalorder %s813_s11, 1  ;;  %s104_s2 = scalar_lea.sflag [#allocation4], %s103_s22 }
  0x16   : > { %s815_s3 = smov 128   ;;  %s816_s4 = smov 8  }
  0x17   : > { %638 = dma.hbm_to_vmem [thread:$0]  (!%p636_p0), %s117_s30, 1024, %s119_s29, %s104_s2, %s815_s3, %s815_s3, %s816_s4  }
  0x18   : > { %p126_p2 = scmp.lt.s32.totalorder %s813_s11, 3 }
  0x1a   : > { %p127_p3 = pnand %p621_p1, %p126_p2 }
  0x1b   : > { %s907_s5 = sand.u32 (!%p127_p3), 1, %s797_s7  }
  0x1c   : > { %130 = sbr.rel (%p127_p3) target bundleno = 356 (0x164), region = 24  ;;  %s622_s12 = sshll.u32 (!%p127_p3), %s907_s5, 6 }
  0x1d   : > { %s133_s13 = scalar_lea.sflag (!%p127_p3), [#allocation4], %s907_s5  ;;  %s136_s15 = scalar_lea.vmem (!%p127_p3), [#allocation3], %s622_s12 }
  0x21   : > { %784 = dma.done.wait (%p880_p8), %s133_s13, 1024  }
  0x22   : > { %786 = vsyncadd (%p880_p8), %s133_s13, 4294966272  ;;  %vm158_vm0 = vcmask 146432   ;;  %v817_v0 = vmov 0.0   ;;  %v174_v1 = vld [vmem:[%s136_s15 + $0x10] sm:$0xff]  ;;  %v172_v2 = vld [vmem:[%s136_s15] sm:$0xff]  ;;  %s818_s16 = smov 1  }
  0x23   : > { %163 = vst.msk [vmem:[#allocation2 + $0x18] sm:$0xff] %vm158_vm0, %v817_v0  ;;  %192 = vrot.lane.b32.xlu1 %v174_v1, %s818_s16  ;;  %188 = vrot.lane.b32.xlu0 %v172_v2, %s818_s16  ;;  %v176_v3 = vld [vmem:[%s136_s15 + $0x20] sm:$0xff]  ;;  %v175_v4 = vld [vmem:[%s136_s15 + $0x18] sm:$0xff]  ;;  %vm161_vm1 = vcmask 140288   ;;  %vm212_vm2 = vcmask 138248   ;;  %s819_s17 = smov 127  }
  0x24   : > { %164 = vst.msk [vmem:[#allocation2 + $0x20] sm:$0xff] %vm158_vm0, %v817_v0  ;;  %196 = vrot.lane.b32.xlu2 %v176_v3, %s818_s16  ;;  %v173_v5 = vld [vmem:[%s136_s15 + $0x8] sm:$0xff]  ;;  %v178_v7 = vld [vmem:[%s136_s15 + $0x30] sm:$0xff]  ;;  %v179_v8 = vld [vmem:[%s136_s15 + $0x38] sm:$0xff]  ;;  %s820_s18 = smov 126   ;;  %vm409_vm3 = vcmask 1046528  }
  0x25   : > { %159 = vst.msk [vmem:[#allocation2] sm:$0xff] %vm158_vm0, %v817_v0  ;;  %v177_v6 = vld [vmem:[%s136_s15 + $0x28] sm:$0xff]  ;;  %vm462_vm4 = vcmask 1045504   ;;  %vm499_vm5 = vcmask 130048   ;;  %s972_s22 = scalar_lea.vmem [#allocation6], %s622_s12  ;;  %s630_s23 = sshll.u32 %s805_s9, 6 }
  0x26   : > { %160 = vst.msk [vmem:[#allocation2 + $0x8] sm:$0xff] %vm158_vm0, %v817_v0  ;;  %s523_s26 = scalar_lea.hbm %s1052_s1, %s630_s23  ;;  %s524_s9 = sshll.u32 %s972_s22, 4  ;;  %s525_s9 = int_to_ptr.vmem [resolvable:$true] %s524_s9 }
  0x27   : > { %166 = vst.msk [vmem:[#allocation2 + $0x30] sm:$0xff] %vm158_vm0, %v817_v0  ;;  %s526_s27 = sshll.u32 %s523_s26, 4  ;;  %s509_s28 = scalar_lea.sflag [#allocation5], %s907_s5  ;;  %s527_s27 = int_to_ptr.hbm [resolvable:$true] %s526_s27 }
  0x28   : > { %167 = vst.msk [vmem:[#allocation2 + $0x38] sm:$0xff] %vm158_vm0, %v817_v0  ;;  %s745_s29 = sshra.s32 %s527_s27, 4  ;;  %s751_s4 = scalar_lea.hbm %s1052_s1, 128  ;;  %s746_s29 = int_to_ptr.hbm [resolvable:$true] %s745_s29 }
  0x29   : > { %169 = vst.msk [vmem:[#allocation2 + $0x48] sm:$0xff] %vm158_vm0, %v817_v0  ;;  %s747_s30 = scalar_lea.hbm %s746_s29, 64  ;;  %p752_p7 = scmp.lt.s32.totalorder %s746_s29, %s1052_s1 }
  0x2a   : > { %170 = vst.msk [vmem:[#allocation2 + $0x50] sm:$0xff] %vm158_vm0, %v817_v0  ;;  %p748_p4 = scmp.ne.s32.totalorder %s746_s29, %s747_s30  ;;  %p753_p8 = scmp.lt.s32.totalorder %s751_s4, %s747_s30 }
  0x2b   : > { %194 = vrot.lane.b32.xlu1 %v175_v4, %s818_s16  ;;  %190 = vrot.lane.b32.xlu0 %v173_v5, %s818_s16  ;;  %165 = vst.msk [vmem:[#allocation2 + $0x28] sm:$0x3] %vm161_vm1, %v817_v0 }
  0x2c   : > { %198 = vrot.lane.b32.xlu2 %v177_v6, %s818_s16  ;;  %162 = vst.msk [vmem:[#allocation2 + $0x10] sm:$0x3] %vm161_vm1, %v817_v0  ;;  %p749_p5 = pnand %p748_p4, %p884_p9  ;;  %p754_p10 = por %p753_p8, %p752_p7 }
  0x2d   : > { %168 = vst.msk [vmem:[#allocation2 + $0x40] sm:$0x3] %vm161_vm1, %v817_v0 }
  0x2e   : > { %171 = vst.msk [vmem:[#allocation2 + $0x58] sm:$0x3] %vm161_vm1, %v817_v0  ;;  %p750_p6 = pneg %p749_p5 }
  0x30   : > { %p755_p13 = pnand %p754_p10, %p750_p6 }
  0x33   : > { %200 = vrot.lane.b32.xlu0 %v178_v7, %s818_s16  ;;  %202 = vrot.lane.b32.xlu1 %v179_v8, %s818_s16 }
  0x7e   : > { %v197_v9 = vpop.permute.xlu2 %196 }
  0x7f   : > { %217 = vst.msk [vmem:[#allocation2 + $0x31] sm:$0xff] %vm212_vm2, %v197_v9 }
  0x86   : > { %v199_v10 = vpop.permute.xlu2 %198  ;;  %v227_v26 = vld [vmem:[#allocation2 + $0x30] sm:$0xff] }
  0x87   : > { %218 = vst.msk [vmem:[#allocation2 + $0x39] sm:$0xff] %vm212_vm2, %v199_v10  ;;  %v251_v29 = vmul.f32 0.5, %v227_v26  ;;  %v937_v47 = vmul.f32 0.25, %v227_v26 }
  0x8e   : > { %v229_v31 = vld [vmem:[#allocation2 + $0x40] sm:$0x3]  ;;  %v228_v33 = vld [vmem:[#allocation2 + $0x38] sm:$0xff] }
  0x8f   : > { %v253_v34 = vmul.f32 0.5, %v229_v31  ;;  %v252_v36 = vmul.f32 0.5, %v228_v33  ;;  %v940_v48 = vmul.f32 0.25, %v229_v31  ;;  %v942_v49 = vmul.f32 0.25, %v228_v33 }
  0x95   : > { %v193_v11 = vpop.permute.xlu1 %192  ;;  %v189_v12 = vpop.permute.xlu0 %188 }
  0x96   : > { %215 = vst.msk [vmem:[#allocation2 + $0x19] sm:$0xff] %vm212_vm2, %v193_v11 }
  0x97   : > { %213 = vst.msk [vmem:[#allocation2 + $0x1] sm:$0xff] %vm212_vm2, %v189_v12 }
  0x9d   : > { %v195_v13 = vpop.permute.xlu1 %194  ;;  %v191_v14 = vpop.permute.xlu0 %190  ;;  %v224_v17 = vld [vmem:[#allocation2 + $0x18] sm:$0xff] }
  0x9e   : > { %216 = vst.msk [vmem:[#allocation2 + $0x21] sm:$0xff] %vm212_vm2, %v195_v13  ;;  %v221_v15 = vld [vmem:[#allocation2] sm:$0xff]  ;;  %v248_v22 = vmul.f32 0.5, %v224_v17  ;;  %v236_v44 = vmul.f32 0.25, %v224_v17 }
  0x9f   : > { %214 = vst.msk [vmem:[#allocation2 + $0x9] sm:$0xff] %vm212_vm2, %v191_v14  ;;  %v245_v16 = vmul.f32 0.5, %v221_v15  ;;  %v233_v41 = vmul.f32 0.25, %v221_v15 }
  0xa1   : > { %269 = vrot.lane.b32.xlu2 %v245_v16, %s819_s17 }
  0xa5   : > { %v201_v18 = vpop.permute.xlu0 %200  ;;  %v203_v19 = vpop.permute.xlu1 %202  ;;  %v226_v25 = vld [vmem:[#allocation2 + $0x28] sm:$0x3]  ;;  %v225_v27 = vld [vmem:[#allocation2 + $0x20] sm:$0xff] }
  0xa6   : > { %v223_v20 = vld [vmem:[#allocation2 + $0x10] sm:$0x3]  ;;  %v222_v21 = vld [vmem:[#allocation2 + $0x8] sm:$0xff]  ;;  %219 = vst.msk [vmem:[#allocation2 + $0x49] sm:$0xff] %vm212_vm2, %v201_v18  ;;  %v250_v28 = vmul.f32 0.5, %v226_v25  ;;  %v249_v30 = vmul.f32 0.5, %v225_v27 }
  0xa7   : > { %v247_v23 = vmul.f32 0.5, %v223_v20  ;;  %v246_v24 = vmul.f32 0.5, %v222_v21  ;;  %220 = vst.msk [vmem:[#allocation2 + $0x51] sm:$0xff] %vm212_vm2, %v203_v19  ;;  %v235_v42 = vmul.f32 0.25, %v223_v20  ;;  %v234_v43 = vmul.f32 0.25, %v222_v21 }
  0xa8   : > { %v238_v45 = vmul.f32 0.25, %v226_v25  ;;  %v237_v46 = vmul.f32 0.25, %v225_v27 }
  0xa9   : > { %273 = vrot.lane.b32.xlu1 %v247_v23, %s819_s17  ;;  %271 = vrot.lane.b32.xlu0 %v246_v24, %s819_s17 }
  0xaa   : > { %275 = vrot.lane.b32.xlu2 %v248_v22, %s819_s17 }
  0xad   : > { %v230_v32 = vld [vmem:[#allocation2 + $0x48] sm:$0xff] }
  0xae   : > { %v254_v35 = vmul.f32 0.5, %v230_v32  ;;  %v232_v37 = vld [vmem:[#allocation2 + $0x58] sm:$0x3]  ;;  %v231_v38 = vld [vmem:[#allocation2 + $0x50] sm:$0xff]  ;;  %v944_v50 = vmul.f32 0.25, %v230_v32 }
  0xaf   : > { %v256_v39 = vmul.f32 0.5, %v232_v37  ;;  %v255_v40 = vmul.f32 0.5, %v231_v38  ;;  %v949_v51 = vmul.f32 0.25, %v232_v37  ;;  %v951_v52 = vmul.f32 0.25, %v231_v38 }
  0xb1   : > { %279 = vrot.lane.b32.xlu1 %v250_v28, %s819_s17  ;;  %277 = vrot.lane.b32.xlu0 %v249_v30, %s819_s17 }
  0xb2   : > { %281 = vrot.lane.b32.xlu2 %v251_v29, %s819_s17 }
  0xb9   : > { %285 = vrot.lane.b32.xlu1 %v253_v34, %s819_s17  ;;  %283 = vrot.lane.b32.xlu0 %v252_v36, %s819_s17 }
  0xba   : > { %287 = vrot.lane.b32.xlu2 %v254_v35, %s819_s17 }
  0xc1   : > { %291 = vrot.lane.b32.xlu1 %v256_v39, %s819_s17  ;;  %289 = vrot.lane.b32.xlu0 %v255_v40, %s819_s17 }
  0xc2   : > { %329 = vrot.lane.b32.xlu2 %v233_v41, %s820_s18 }
  0xc9   : > { %333 = vrot.lane.b32.xlu1 %v235_v42, %s820_s18  ;;  %331 = vrot.lane.b32.xlu0 %v234_v43, %s820_s18 }
  0xca   : > { %335 = vrot.lane.b32.xlu2 %v236_v44, %s820_s18 }
  0xd1   : > { %339 = vrot.lane.b32.xlu1 %v238_v45, %s820_s18  ;;  %337 = vrot.lane.b32.xlu0 %v237_v46, %s820_s18 }
  0xd2   : > { %341 = vrot.lane.b32.xlu2 %v937_v47, %s820_s18 }
  0xd9   : > { %345 = vrot.lane.b32.xlu1 %v940_v48, %s820_s18  ;;  %343 = vrot.lane.b32.xlu0 %v942_v49, %s820_s18 }
  0xda   : > { %347 = vrot.lane.b32.xlu2 %v944_v50, %s820_s18 }
  0xe1   : > { %351 = vrot.lane.b32.xlu1 %v949_v51, %s820_s18  ;;  %349 = vrot.lane.b32.xlu0 %v951_v52, %s820_s18 }
  0xfb   : > { %v270_v53 = vpop.permute.xlu2 %269 }
  0xfc   : > { %v305_v2 = vadd.f32 %v270_v53, %v233_v41 }
 0x104   : > { %v276_v54 = vpop.permute.xlu2 %275 }
 0x105   : > { %v308_v12 = vadd.f32 %v276_v54, %v236_v44 }
 0x10c   : > { %v282_v55 = vpop.permute.xlu2 %281 }
 0x10d   : > { %v311_v39 = vadd.f32 %v282_v55, %v937_v47 }
 0x114   : > { %v955_v60 = vpop.permute.xlu2 %287 }
 0x11b   : > { %v274_v56 = vpop.permute.xlu1 %273  ;;  %v272_v57 = vpop.permute.xlu0 %271 }
 0x11c   : > { %v330_v63 = vpop.permute.xlu2 %329  ;;  %v307_v5 = vadd.f32 %v274_v56, %v235_v42  ;;  %v306_v6 = vadd.f32 %v272_v57, %v234_v43 }
 0x11d   : > { %v365_v3 = vadd.f32 %v330_v63, %v305_v2 }
 0x11f   : > { %v385_v7 = vmul.f32 0.5, %v365_v3  ;;  %v377_v13 = vmul.f32 0.25, %v365_v3 }
 0x121   : > { %v410_v18 = vrot.slane %v385_v7, 1  ;;  %v463_v24 = vrot.slane %v377_v13, 2 }
 0x123   : > { %v280_v58 = vpop.permute.xlu1 %279  ;;  %v278_v59 = vpop.permute.xlu0 %277 }
 0x124   : > { %v336_v4 = vpop.permute.xlu2 %335  ;;  %v310_v25 = vadd.f32 %v280_v58, %v238_v45  ;;  %v309_v26 = vadd.f32 %v278_v59, %v237_v46 }
 0x125   : > { %v368_v19 = vadd.f32 %v336_v4, %v308_v12 }
 0x127   : > { %v388_v30 = vmul.f32 0.5, %v368_v19  ;;  %v379_v40 = vmul.f32 0.25, %v368_v19 }
 0x129   : > { %v415_v53 = vrot.slane %v388_v30, 1  ;;  %v468_v58 = vrot.slane %v379_v40, 2 }
 0x12b   : > { %v957_v61 = vpop.permute.xlu1 %285  ;;  %v959_v62 = vpop.permute.xlu0 %283 }
 0x12c   : > { %v342_v27 = vpop.permute.xlu2 %341  ;;  %v313_v59 = vadd.f32 %v957_v61, %v940_v48  ;;  %v312_v63 = vadd.f32 %v959_v62, %v942_v49  ;;  %v314_v49 = vadd.f32 %v955_v60, %v944_v50 }
 0x12d   : > { %v371_v54 = vadd.f32 %v342_v27, %v311_v39 }
 0x12f   : > { %v391_v4 = vmul.f32 0.5, %v371_v54  ;;  %v381_v62 = vmul.f32 0.25, %v371_v54 }
 0x133   : > { %v961_v0 = vpop.permute.xlu1 %291  ;;  %v963_v1 = vpop.permute.xlu0 %289 }
 0x134   : > { %v316_v50 = vadd.f32 %v961_v0, %v949_v51  ;;  %v315_v60 = vadd.f32 %v963_v1, %v951_v52 }
 0x13b   : > { %v334_v8 = vpop.permute.xlu1 %333  ;;  %v332_v9 = vpop.permute.xlu0 %331 }
 0x13c   : > { %v367_v10 = vadd.f32 %v334_v8, %v307_v5  ;;  %v366_v11 = vadd.f32 %v332_v9, %v306_v6  ;;  %v348_v9 = vpop.permute.xlu2 %347 }
 0x13d   : > { %v374_v19 = vadd.f32 %v348_v9, %v314_v49 }
 0x13e   : > { %v387_v14 = vmul.f32 0.5, %v367_v10  ;;  %v446_v15 = vmul.f32 0.25, %v367_v10  ;;  %v378_v16 = vmul.f32 0.25, %v366_v11  ;;  %v386_v17 = vmul.f32 0.5, %v366_v11 }
 0x13f   : > { %v394_v27 = vmul.f32 0.5, %v374_v19  ;;  %v383_v0 = vmul.f32 0.25, %v374_v19 }
 0x140   : > { %v413_v20 = vrot.slane %v387_v14, 1  ;;  %v466_v21 = vrot.slane %v446_v15, 2  ;;  %v411_v22 = vrot.slane %v386_v17, 1  ;;  %v464_v23 = vrot.slane %v378_v16, 2 }
 0x141   : > { %v425_v39 = vrot.slane %v394_v27, 1 }
 0x142   : > { %v412_v28 = vsel %vm409_vm3, %v410_v18, %v411_v22  ;;  %v414_v29 = vsel %vm409_vm3, %v411_v22, %v413_v20  ;;  %v465_v35 = vsel %vm462_vm4, %v463_v24, %v464_v23  ;;  %v467_v36 = vsel %vm462_vm4, %v464_v23, %v466_v21 }
 0x143   : > { %v438_v31 = vadd.f32 %v412_v28, %v377_v13  ;;  %v439_v32 = vadd.f32 %v414_v29, %v378_v16  ;;  %v340_v33 = vpop.permute.xlu1 %339  ;;  %v338_v34 = vpop.permute.xlu0 %337  ;;  %v420_v18 = vrot.slane %v391_v4, 1  ;;  %v473_v24 = vrot.slane %v381_v62, 2 }
 0x144   : > { %v370_v37 = vadd.f32 %v340_v33, %v310_v25  ;;  %v369_v38 = vadd.f32 %v338_v34, %v309_v26 }
 0x145   : > { %v491_v41 = vadd.f32 %v465_v35, %v438_v31  ;;  %v492_v42 = vadd.f32 %v467_v36, %v439_v32 }
 0x146   : > { %v390_v43 = vmul.f32 0.5, %v370_v37  ;;  %v447_v44 = vmul.f32 0.25, %v370_v37  ;;  %v380_v45 = vmul.f32 0.25, %v369_v38  ;;  %v389_v46 = vmul.f32 0.5, %v369_v38 }
 0x147   : > { %500 = vst.msk [vmem:[%s972_s22] sm:$0xff] %vm499_vm5, %v491_v41 }
 0x148   : > { %501 = vst.msk [vmem:[%s972_s22 + $0x8] sm:$0xff] %vm499_vm5, %v492_v42  ;;  %v418_v56 = vrot.slane %v390_v43, 1  ;;  %v471_v47 = vrot.slane %v447_v44, 2  ;;  %v416_v55 = vrot.slane %v389_v46, 1  ;;  %v469_v57 = vrot.slane %v380_v45, 2 }
 0x149   : > { %v478_v44 = vrot.slane %v383_v0, 2 }
 0x14a   : > { %v417_v2 = vsel %vm409_vm3, %v415_v53, %v416_v55  ;;  %v419_v3 = vsel %vm409_vm3, %v416_v55, %v418_v56  ;;  %v470_v10 = vsel %vm462_vm4, %v468_v58, %v469_v57  ;;  %v472_v11 = vsel %vm462_vm4, %v469_v57, %v471_v47 }
 0x14b   : > { %v440_v5 = vadd.f32 %v417_v2, %v379_v40  ;;  %v441_v6 = vadd.f32 %v419_v3, %v380_v45  ;;  %v346_v7 = vpop.permute.xlu1 %345  ;;  %v344_v8 = vpop.permute.xlu0 %343 }
 0x14c   : > { %v373_v48 = vadd.f32 %v346_v7, %v313_v59  ;;  %v372_v61 = vadd.f32 %v344_v8, %v312_v63 }
 0x14d   : > { %v493_v12 = vadd.f32 %v470_v10, %v440_v5  ;;  %v494_v13 = vadd.f32 %v472_v11, %v441_v6 }
 0x14e   : > { %v393_v14 = vmul.f32 0.5, %v373_v48  ;;  %v448_v15 = vmul.f32 0.25, %v373_v48  ;;  %v382_v16 = vmul.f32 0.25, %v372_v61  ;;  %v392_v17 = vmul.f32 0.5, %v372_v61 }
 0x14f   : > { %502 = vst.msk [vmem:[%s972_s22 + $0x10] sm:$0xff] %vm499_vm5, %v493_v12 }
 0x150   : > { %503 = vst.msk [vmem:[%s972_s22 + $0x18] sm:$0xff] %vm499_vm5, %v494_v13  ;;  %v423_v20 = vrot.slane %v393_v14, 1  ;;  %v476_v21 = vrot.slane %v448_v15, 2  ;;  %v421_v22 = vrot.slane %v392_v17, 1  ;;  %v474_v23 = vrot.slane %v382_v16, 2 }
 0x152   : > { %v422_v25 = vsel %vm409_vm3, %v420_v18, %v421_v22  ;;  %v424_v26 = vsel %vm409_vm3, %v421_v22, %v423_v20  ;;  %v475_v32 = vsel %vm462_vm4, %v473_v24, %v474_v23  ;;  %v477_v33 = vsel %vm462_vm4, %v474_v23, %v476_v21 }
 0x153   : > { %v442_v28 = vadd.f32 %v422_v25, %v381_v62  ;;  %v443_v29 = vadd.f32 %v424_v26, %v382_v16  ;;  %v352_v30 = vpop.permute.xlu1 %351  ;;  %v350_v31 = vpop.permute.xlu0 %349 }
 0x154   : > { %v376_v34 = vadd.f32 %v352_v30, %v316_v50  ;;  %v375_v51 = vadd.f32 %v350_v31, %v315_v60 }
 0x155   : > { %v495_v52 = vadd.f32 %v475_v32, %v442_v28  ;;  %v496_v1 = vadd.f32 %v477_v33, %v443_v29 }
 0x156   : > { %v396_v35 = vmul.f32 0.5, %v376_v34  ;;  %v449_v36 = vmul.f32 0.25, %v376_v34  ;;  %v384_v37 = vmul.f32 0.25, %v375_v51  ;;  %v395_v38 = vmul.f32 0.5, %v375_v51 }
 0x157   : > { %504 = vst.msk [vmem:[%s972_s22 + $0x20] sm:$0xff] %vm499_vm5, %v495_v52 }
 0x158   : > { %505 = vst.msk [vmem:[%s972_s22 + $0x28] sm:$0xff] %vm499_vm5, %v496_v1  ;;  %v428_v40 = vrot.slane %v396_v35, 1  ;;  %v481_v41 = vrot.slane %v449_v36, 2  ;;  %v426_v42 = vrot.slane %v395_v38, 1  ;;  %v479_v43 = vrot.slane %v384_v37, 2 }
 0x15a   : > { %v427_v45 = vsel %vm409_vm3, %v425_v39, %v426_v42  ;;  %v429_v46 = vsel %vm409_vm3, %v426_v42, %v428_v40  ;;  %v480_v56 = vsel %vm462_vm4, %v478_v44, %v479_v43  ;;  %v482_v47 = vsel %vm462_vm4, %v479_v43, %v481_v41 }
 0x15b   : > { %v444_v53 = vadd.f32 %v427_v45, %v383_v0  ;;  %v445_v54 = vadd.f32 %v429_v46, %v384_v37 }
 0x15d   : > { %v497_v55 = vadd.f32 %v480_v56, %v444_v53  ;;  %v498_v57 = vadd.f32 %v482_v47, %v445_v54 }
 0x15f   : > { %506 = vst.msk [vmem:[%s972_s22 + $0x30] sm:$0xff] %vm499_vm5, %v497_v55 }
 0x160   : > { %507 = vst.msk [vmem:[%s972_s22 + $0x38] sm:$0xff] %vm499_vm5, %v498_v57 }
 0x161   : > { %758 = shalt.err (!%p755_p13)
}
 0x162   : > { %s821_s5 = smov 128   ;;  %s822_s15 = smov 8  }
 0x163   : > { %633 = dma.vmem_to_hbm [thread:$0]  (%p884_p9), %s525_s9, 1024, %s527_s27, %s509_s28, %s821_s5, %s821_s5, %s822_s15  }
 0x164 PF: > { %s541_s16 = sand.u32 1, %s793_s6   ;;  %p640_p0 = pnand %p617_p12, %p891_p11 }
 0x165   : > { %s542_s17 = scalar_lea.sflag [#allocation5], %s541_s16 }
 0x166   : > { %p641_p1 = pneg %p640_p0 }
 0x168   : > { %788 = dma.done.wait (%p641_p1), %s542_s17, 1024  }
 0x169   : > { %790 = vsyncadd (%p641_p1), %s542_s17, 4294966272  ;;  %s17_s11 = sadd.s32 1, %s813_s11   ;;  %s1057_s6 = smov %s797_s7 }
 0x16a   : > { %p14_p2 = scmp.ge.s32.totalorder %s17_s11, 4   ;;  %s1058_s7 = smov %s801_s8 }
 0x16b   : > { %s1059_s8 = smov %s889_s20  ;;  %s1060_s9 = smov %s809_s10 }
 0x16c   : > { %s1061_s10 = smov %s1063_s14  ;;  %16 = sbr.rel (!%p14_p2) target bundleno = 6 (0x6), region = 69 }
 0x171   :  { %548 = vsyncpa [#allocation4], 1 }
 0x172   :  { %550 = vsyncpa [#allocation4 + $0x1], 1 }
 0x173   :  { %551 = vsyncpa [#allocation5], 1 }
 0x174   :  { %553 = vsyncpa [#allocation5 + $0x1], 1 }

</bundles_post_ra>
